<compile_context>
chip_gen: v5e
topology: v5e:2x2
jax: 0.10.0
libtpu: 0.0.40
codegen_flags: <defaults>
</compile_context>

<pallas_src>
import math
import jax
import jax.numpy as jnp
from jax.experimental import pallas as pl
from jax.experimental.pallas import tpu as pltpu

# ---- configuration (small shapes consistent with the module) ----------------
B, F = 8, 32          # batch, in_features
N, K = 4, 4           # num_nodes, num_branches
RANK = 2              # low-rank factor
M = N * K             # number of mixture components


# ---- Woodbury precompute (parameter-only; plain JAX glue) --------------------
def woodbury_inverse_jax(diag_a, mat_u, rank):
    """(A + U U^T)^-1 via the Woodbury identity. diag_a: (M,F), mat_u: (M,F,r)."""
    a_inv = 1.0 / diag_a                                        # (M, F)
    ut_ainv = jnp.swapaxes(mat_u, 1, 2) * a_inv[:, None, :]     # (M, r, F)
    cap = jnp.eye(rank, dtype=diag_a.dtype)[None] + ut_ainv @ mat_u   # (M, r, r)
    cap_inv = jnp.linalg.inv(cap)
    ainv_u = a_inv[:, :, None] * mat_u                          # (M, F, r)
    a_inv_mat = a_inv[:, :, None] * jnp.eye(F, dtype=diag_a.dtype)[None]
    return a_inv_mat - ainv_u @ cap_inv @ jnp.swapaxes(ainv_u, 1, 2)


def woodbury_logdet_jax(diag_a, mat_u, rank):
    """logdet(A + U U^T) via the matrix determinant lemma."""
    a_inv = 1.0 / diag_a
    ut_ainv = jnp.swapaxes(mat_u, 1, 2) * a_inv[:, None, :]
    cap = jnp.eye(rank, dtype=diag_a.dtype)[None] + ut_ainv @ mat_u
    return jnp.linalg.slogdet(cap)[1] + jnp.sum(jnp.log(diag_a), axis=-1)


# ---- Pallas kernel (single invocation, everything in VMEM) -------------------
def _layer_kernel(x_ref, vinvp_ref, tmat_ref, smat_ref, lt_ref, bias_ref,
                  path_ref, out_ref):
    """
    x_ref:     (B, F)       input features
    vinvp_ref: (F, M*F)     packed precision matrices: vinvp[g, m*F+f] = Vinv_m[g, f]
    tmat_ref:  (F, M*F)     tiling matrix  (x @ tmat)[b, m*F+f] = x[b, f]
    smat_ref:  (M*F, M)     block-sum matrix (sums each F-block to one component)
    lt_ref:    (F, M)       Lt[f, m] = (Vinv_m w_m)[f]
    bias_ref:  (1, M)       -0.5 * (w_m^T Vinv_m w_m + logdet_m)
    path_ref:  (B, N)       node-reach probabilities
    out_ref:   (B, M)       output = path * softmax-over-branches
    """
    x = x_ref[...]                                                       # (B, F)
    # x^T Vinv_m x for all m, as lane-dense matmuls.
    y = jnp.dot(x, vinvp_ref[...], preferred_element_type=jnp.float32)   # (B, M*F)
    xt = jnp.dot(x, tmat_ref[...], preferred_element_type=jnp.float32)   # (B, M*F)
    quad = jnp.dot(y * xt, smat_ref[...],
                   preferred_element_type=jnp.float32)                   # (B, M)
    # x^T Vinv_m w_m for all m.
    xl = jnp.dot(x, lt_ref[...], preferred_element_type=jnp.float32)     # (B, M)
    # logits_m = -0.5 * (d^T Vinv_m d + logdet_m), expanded form.
    logits = -0.5 * quad + xl + bias_ref[...]                            # (B, M)

    # Per-node (segment of K branches) max-stabilized softmax, scaled by path.
    for n in range(N):                                                   # N small & static
        l_n = logits[:, n * K:(n + 1) * K]                               # (B, K)
        m_n = jnp.max(l_n, axis=1, keepdims=True)
        e_n = jnp.exp(l_n - m_n)
        s_n = jnp.sum(e_n, axis=1, keepdims=True)
        p_n = e_n * pl.reciprocal(s_n, approx=True)                      # (B, K)
        out_ref[:, n * K:(n + 1) * K] = p_n * path_ref[:, n:n + 1]


@jax.jit
def layer_forward(x, path, weight, cov_di, cov_lr):
    """Pallas-backed equivalent of Layer.forward (cov='both')."""
    # ---- parameter-only precompute (JAX glue) ----
    diag_a = jax.nn.softplus(cov_di)                                    # (M, F)
    var_inv = woodbury_inverse_jax(diag_a, cov_lr, RANK)                # (M, F, F)
    logdets = woodbury_logdet_jax(diag_a, cov_lr, RANK)                 # (M,)
    lvec = jnp.einsum('mfg,mg->mf', var_inv, weight)                    # Vinv_m w_m : (M, F)
    cvec = jnp.einsum('mf,mf->m', weight, lvec)                         # w^T Vinv w : (M,)
    bias = (-0.5 * (cvec + logdets)).reshape(1, M).astype(jnp.float32)  # (1, M)
    vinvp = jnp.transpose(var_inv, (1, 0, 2)).reshape(F, M * F)         # (F, M*F)
    lt = lvec.T                                                         # (F, M)
    # Constant helper matrices (shape-only).
    tmat = jnp.tile(jnp.eye(F, dtype=jnp.float32), (1, M))              # (F, M*F)
    smat = jnp.repeat(jnp.eye(M, dtype=jnp.float32), F, axis=0)         # (M*F, M)

    vmem = pltpu.MemorySpace.VMEM
    return pl.pallas_call(
        _layer_kernel,
        out_shape=jax.ShapeDtypeStruct((B, M), jnp.float32),
        in_specs=[pl.BlockSpec(memory_space=vmem)] * 7,
        out_specs=pl.BlockSpec(memory_space=vmem),
    )(x, vinvp, tmat, smat, lt, bias, path)


# ---- pure-JAX reference (mirrors the PyTorch forward, diff form) -------------
def reference_forward(x, path, weight, cov_di, cov_lr):
    diag_a = jax.nn.softplus(cov_di)
    var_inv = woodbury_inverse_jax(diag_a, cov_lr, RANK)
    logdets = woodbury_logdet_jax(diag_a, cov_lr, RANK)
    diff = x[:, None, :] - weight[None, :, :]                           # (B, M, F)
    quad = jnp.einsum('bmf,mfg,bmg->bm', diff, var_inv, diff)           # (B, M)
    logits = -0.5 * (quad + logdets[None, :])
    probs = jax.nn.softmax(logits.reshape(B, N, K), axis=2)
    return (path[:, :, None] * probs).reshape(B, N * K)


if __name__ == "__main__":
    key = jax.random.PRNGKey(0)
    k_x, k_p, k_w, k_di, k_lr = jax.random.split(key, 5)

    # Deterministic parameter init (shapes per Layer.__init__; module inits
    # weight to zeros -- we use small random values so the test is non-degenerate).
    weight = 0.1 * jax.random.normal(k_w, (M, F), dtype=jnp.float32)
    cov_di = (jnp.full((M, F), math.log(math.e - 1), dtype=jnp.float32)
              + 0.1 * jax.random.normal(k_di, (M, F), dtype=jnp.float32))
    cov_lr = jax.random.normal(k_lr, (M, F, RANK), dtype=jnp.float32) / math.sqrt(F * RANK)

    # Inputs.
    x = jax.random.normal(k_x, (B, F), dtype=jnp.float32)
    path = jax.nn.softmax(jax.random.normal(k_p, (B, N), dtype=jnp.float32), axis=1)

    out = jax.block_until_ready(layer_forward(x, path, weight, cov_di, cov_lr))
    ref = jax.block_until_ready(reference_forward(x, path, weight, cov_di, cov_lr))

    assert out.shape == (B, N * K)
    assert jnp.allclose(out, ref, rtol=1e-3, atol=1e-3), "mismatch vs reference"
    print("KERNEL_OK")
</pallas_src>

<mosaic_0001>
module attributes {stable_mosaic.version = 11 : i64} {
  func.func @_layer_kernel(%arg0: memref<8x32xf32, #tpu.memory_space<vmem>>, %arg1: memref<32x512xf32, #tpu.memory_space<vmem>>, %arg2: memref<32x512xf32, #tpu.memory_space<vmem>>, %arg3: memref<512x16xf32, #tpu.memory_space<vmem>>, %arg4: memref<32x16xf32, #tpu.memory_space<vmem>>, %arg5: memref<1x16xf32, #tpu.memory_space<vmem>>, %arg6: memref<8x4xf32, #tpu.memory_space<vmem>>, %arg7: memref<8x16xf32, #tpu.memory_space<vmem>>) attributes {dimension_semantics = [], scalar_prefetch = 0 : i64, scratch_operands = 0 : i64, tpu.core_type = #tpu.core_type<tc>} {
    %c0 = arith.constant 0 : index
    %c0_0 = arith.constant 0 : index
    %0 = vector.load %arg0[%c0, %c0_0] : memref<8x32xf32, #tpu.memory_space<vmem>>, vector<8x32xf32>
    %c0_1 = arith.constant 0 : index
    %c0_2 = arith.constant 0 : index
    %1 = vector.load %arg1[%c0_1, %c0_2] : memref<32x512xf32, #tpu.memory_space<vmem>>, vector<32x512xf32>
    %cst = arith.constant dense<0.000000e+00> : vector<8x512xf32>
    %2 = tpu.matmul %0, %1, %cst {dimension_numbers = #tpu.dot_dimension_numbers<[1], [0], [0], [1], [0, 0, 1, 1], [], []>} : vector<8x32xf32>, vector<32x512xf32>, vector<8x512xf32> -> vector<8x512xf32>
    %c0_3 = arith.constant 0 : index
    %c0_4 = arith.constant 0 : index
    %3 = vector.load %arg2[%c0_3, %c0_4] : memref<32x512xf32, #tpu.memory_space<vmem>>, vector<32x512xf32>
    %cst_5 = arith.constant dense<0.000000e+00> : vector<8x512xf32>
    %4 = tpu.matmul %0, %3, %cst_5 {dimension_numbers = #tpu.dot_dimension_numbers<[1], [0], [0], [1], [0, 0, 1, 1], [], []>} : vector<8x32xf32>, vector<32x512xf32>, vector<8x512xf32> -> vector<8x512xf32>
    %5 = arith.mulf %2, %4 : vector<8x512xf32>
    %c0_6 = arith.constant 0 : index
    %c0_7 = arith.constant 0 : index
    %6 = vector.load %arg3[%c0_6, %c0_7] : memref<512x16xf32, #tpu.memory_space<vmem>>, vector<512x16xf32>
    %cst_8 = arith.constant dense<0.000000e+00> : vector<8x16xf32>
    %7 = tpu.matmul %5, %6, %cst_8 {dimension_numbers = #tpu.dot_dimension_numbers<[1], [0], [0], [1], [0, 0, 1, 1], [], []>} : vector<8x512xf32>, vector<512x16xf32>, vector<8x16xf32> -> vector<8x16xf32>
    %c0_9 = arith.constant 0 : index
    %c0_10 = arith.constant 0 : index
    %8 = vector.load %arg4[%c0_9, %c0_10] : memref<32x16xf32, #tpu.memory_space<vmem>>, vector<32x16xf32>
    %cst_11 = arith.constant dense<0.000000e+00> : vector<8x16xf32>
    %9 = tpu.matmul %0, %8, %cst_11 {dimension_numbers = #tpu.dot_dimension_numbers<[1], [0], [0], [1], [0, 0, 1, 1], [], []>} : vector<8x32xf32>, vector<32x16xf32>, vector<8x16xf32> -> vector<8x16xf32>
    %cst_12 = arith.constant -5.000000e-01 : f32
    %10 = vector.broadcast %cst_12 : f32 to vector<8x16xf32>
    %11 = arith.mulf %10, %7 : vector<8x16xf32>
    %12 = arith.addf %11, %9 : vector<8x16xf32>
    %c0_13 = arith.constant 0 : index
    %c0_14 = arith.constant 0 : index
    %13 = vector.load %arg5[%c0_13, %c0_14] : memref<1x16xf32, #tpu.memory_space<vmem>>, vector<1x16xf32>
    %14 = vector.broadcast %13 : vector<1x16xf32> to vector<8x16xf32>
    %15 = arith.addf %12, %14 : vector<8x16xf32>
    %16 = vector.extract_strided_slice %15 {offsets = [0, 0], sizes = [8, 4], strides = [1, 1]} : vector<8x16xf32> to vector<8x4xf32>
    %cst_15 = arith.constant dense<0xFF800000> : vector<8xf32>
    %17 = vector.multi_reduction <maximumf>, %16, %cst_15 [1] : vector<8x4xf32> to vector<8xf32>
    %18 = vector.shape_cast %17 : vector<8xf32> to vector<8x1xf32>
    %19 = vector.broadcast %18 : vector<8x1xf32> to vector<8x4xf32>
    %20 = arith.subf %16, %19 : vector<8x4xf32>
    %21 = math.exp %20 : vector<8x4xf32>
    %cst_16 = arith.constant dense<0.000000e+00> : vector<8xf32>
    %22 = vector.multi_reduction <add>, %21, %cst_16 [1] : vector<8x4xf32> to vector<8xf32>
    %23 = vector.shape_cast %22 : vector<8xf32> to vector<8x1xf32>
    %24 = tpu.reciprocal %23 {approx = true} : vector<8x1xf32> -> vector<8x1xf32>
    %25 = vector.broadcast %24 : vector<8x1xf32> to vector<8x4xf32>
    %26 = arith.mulf %21, %25 : vector<8x4xf32>
    %c0_17 = arith.constant 0 : index
    %c0_18 = arith.constant 0 : index
    %27 = vector.load %arg6[%c0_17, %c0_18] : memref<8x4xf32, #tpu.memory_space<vmem>>, vector<8x1xf32>
    %28 = vector.broadcast %27 : vector<8x1xf32> to vector<8x4xf32>
    %29 = arith.mulf %26, %28 : vector<8x4xf32>
    %c0_19 = arith.constant 0 : index
    %c0_20 = arith.constant 0 : index
    %30 = vector.load %arg7[%c0_19, %c0_20] : memref<8x16xf32, #tpu.memory_space<vmem>>, vector<8x4xf32>
    tpu.vector_store %arg7[%c0_19, %c0_20], %29 {strides = array<i32>} : memref<8x16xf32, #tpu.memory_space<vmem>>, vector<8x4xf32>,
    %31 = vector.extract_strided_slice %15 {offsets = [0, 4], sizes = [8, 4], strides = [1, 1]} : vector<8x16xf32> to vector<8x4xf32>
    %cst_21 = arith.constant dense<0xFF800000> : vector<8xf32>
    %32 = vector.multi_reduction <maximumf>, %31, %cst_21 [1] : vector<8x4xf32> to vector<8xf32>
    %33 = vector.shape_cast %32 : vector<8xf32> to vector<8x1xf32>
    %34 = vector.broadcast %33 : vector<8x1xf32> to vector<8x4xf32>
    %35 = arith.subf %31, %34 : vector<8x4xf32>
    %36 = math.exp %35 : vector<8x4xf32>
    %cst_22 = arith.constant dense<0.000000e+00> : vector<8xf32>
    %37 = vector.multi_reduction <add>, %36, %cst_22 [1] : vector<8x4xf32> to vector<8xf32>
    %38 = vector.shape_cast %37 : vector<8xf32> to vector<8x1xf32>
    %39 = tpu.reciprocal %38 {approx = true} : vector<8x1xf32> -> vector<8x1xf32>
    %40 = vector.broadcast %39 : vector<8x1xf32> to vector<8x4xf32>
    %41 = arith.mulf %36, %40 : vector<8x4xf32>
    %c0_23 = arith.constant 0 : index
    %c1 = arith.constant 1 : index
    %42 = vector.load %arg6[%c0_23, %c1] : memref<8x4xf32, #tpu.memory_space<vmem>>, vector<8x1xf32>
    %43 = vector.broadcast %42 : vector<8x1xf32> to vector<8x4xf32>
    %44 = arith.mulf %41, %43 : vector<8x4xf32>
    %c0_24 = arith.constant 0 : index
    %c4 = arith.constant 4 : index
    %45 = vector.load %arg7[%c0_24, %c4] : memref<8x16xf32, #tpu.memory_space<vmem>>, vector<8x4xf32>
    tpu.vector_store %arg7[%c0_24, %c4], %44 {strides = array<i32>} : memref<8x16xf32, #tpu.memory_space<vmem>>, vector<8x4xf32>,
    %46 = vector.extract_strided_slice %15 {offsets = [0, 8], sizes = [8, 4], strides = [1, 1]} : vector<8x16xf32> to vector<8x4xf32>
    %cst_25 = arith.constant dense<0xFF800000> : vector<8xf32>
    %47 = vector.multi_reduction <maximumf>, %46, %cst_25 [1] : vector<8x4xf32> to vector<8xf32>
    %48 = vector.shape_cast %47 : vector<8xf32> to vector<8x1xf32>
    %49 = vector.broadcast %48 : vector<8x1xf32> to vector<8x4xf32>
    %50 = arith.subf %46, %49 : vector<8x4xf32>
    %51 = math.exp %50 : vector<8x4xf32>
    %cst_26 = arith.constant dense<0.000000e+00> : vector<8xf32>
    %52 = vector.multi_reduction <add>, %51, %cst_26 [1] : vector<8x4xf32> to vector<8xf32>
    %53 = vector.shape_cast %52 : vector<8xf32> to vector<8x1xf32>
    %54 = tpu.reciprocal %53 {approx = true} : vector<8x1xf32> -> vector<8x1xf32>
    %55 = vector.broadcast %54 : vector<8x1xf32> to vector<8x4xf32>
    %56 = arith.mulf %51, %55 : vector<8x4xf32>
    %c0_27 = arith.constant 0 : index
    %c2 = arith.constant 2 : index
    %57 = vector.load %arg6[%c0_27, %c2] : memref<8x4xf32, #tpu.memory_space<vmem>>, vector<8x1xf32>
    %58 = vector.broadcast %57 : vector<8x1xf32> to vector<8x4xf32>
    %59 = arith.mulf %56, %58 : vector<8x4xf32>
    %c0_28 = arith.constant 0 : index
    %c8 = arith.constant 8 : index
    %60 = vector.load %arg7[%c0_28, %c8] : memref<8x16xf32, #tpu.memory_space<vmem>>, vector<8x4xf32>
    tpu.vector_store %arg7[%c0_28, %c8], %59 {strides = array<i32>} : memref<8x16xf32, #tpu.memory_space<vmem>>, vector<8x4xf32>,
    %61 = vector.extract_strided_slice %15 {offsets = [0, 12], sizes = [8, 4], strides = [1, 1]} : vector<8x16xf32> to vector<8x4xf32>
    %cst_29 = arith.constant dense<0xFF800000> : vector<8xf32>
    %62 = vector.multi_reduction <maximumf>, %61, %cst_29 [1] : vector<8x4xf32> to vector<8xf32>
    %63 = vector.shape_cast %62 : vector<8xf32> to vector<8x1xf32>
    %64 = vector.broadcast %63 : vector<8x1xf32> to vector<8x4xf32>
    %65 = arith.subf %61, %64 : vector<8x4xf32>
    %66 = math.exp %65 : vector<8x4xf32>
    %cst_30 = arith.constant dense<0.000000e+00> : vector<8xf32>
    %67 = vector.multi_reduction <add>, %66, %cst_30 [1] : vector<8x4xf32> to vector<8xf32>
    %68 = vector.shape_cast %67 : vector<8xf32> to vector<8x1xf32>
    %69 = tpu.reciprocal %68 {approx = true} : vector<8x1xf32> -> vector<8x1xf32>
    %70 = vector.broadcast %69 : vector<8x1xf32> to vector<8x4xf32>
    %71 = arith.mulf %66, %70 : vector<8x4xf32>
    %c0_31 = arith.constant 0 : index
    %c3 = arith.constant 3 : index
    %72 = vector.load %arg6[%c0_31, %c3] : memref<8x4xf32, #tpu.memory_space<vmem>>, vector<8x1xf32>
    %73 = vector.broadcast %72 : vector<8x1xf32> to vector<8x4xf32>
    %74 = arith.mulf %71, %73 : vector<8x4xf32>
    %c0_32 = arith.constant 0 : index
    %c12 = arith.constant 12 : index
    %75 = vector.load %arg7[%c0_32, %c12] : memref<8x16xf32, #tpu.memory_space<vmem>>, vector<8x4xf32>
    tpu.vector_store %arg7[%c0_32, %c12], %74 {strides = array<i32>} : memref<8x16xf32, #tpu.memory_space<vmem>>, vector<8x4xf32>,
    return
  }
}

</mosaic_0001>

<bundles_post_ra>
// kernel: custom-call.11
= control target key start
LH: loop header
LB: loop body
LE: loop exit
PB: predicated region body
PF: predicated region fallthrough
CT: control target
= control target key end

     0   :  { %5 = vsyncpa [#allocation5], 0  ;;  %s896_s0 = inlined_call_operand.vmem [shape: f32[16,2,2], index: 0, kind: input, shape index: {}]   ;;  %s897_s1 = inlined_call_operand.vmem [shape: f32[16,2,2], index: 1, kind: output, shape index: {0}]   ;;  %s898_s2 = inlined_call_operand.hbm [shape: s32[16,2], index: 2, kind: output, shape index: {1}]   ;;  %s899_s3 = inlined_call_operand.vmem [shape: s32[16,2], index: 3, kind: output, shape index: {2}]  }
   0x1   :  { %7 = vsyncpa [#allocation5 + $0x1], 0  ;;  %s723_s12 = smov 0   ;;  %s725_s13 = smov 0  }
   0x2   :  { %s727_s14 = smov 0   ;;  %s729_s15 = smov 0  }
   0x3 LB: > { %s744_s16 = sadd.s32 4294967295, %s696_s15   ;;  %s559_s17 = sadd.s32 4294967294, %s696_s15   ;;  %s696_s15 = sphi %s729_s15, %s907_s15   ;;  %s692_s14 = sphi %s727_s14, %s906_s14   ;;  %s688_s13 = sphi %s725_s13, %s905_s13   ;;  %s684_s12 = sphi %s723_s12, %s904_s12  }
   0x4   : > { %s748_s18 = sadd.s32 1, %s696_s15   ;;  %s17_s19 = sshrl.u32 %s696_s15, 3 }
   0x5   : > { %s18_s20 = sshrl.u32 %s748_s18, 3  ;;  %s22_s21 = sadd.s32 1, %s692_s14 }
   0x6   : > { %s19_s22 = ssub.s32 %s17_s19, %s18_s20  ;;  %p32_p0 = scmp.ne.s32.totalorder %s692_s14, %s688_s13 }
   0x7   : > { %p20_p1 = scmp.eq.s32.totalorder %s19_s22, 0  ;;  %p33_p2 = scmp.eq.s32.totalorder %s744_s16, 15 }
   0x8   : > { %p38_p3 = scmp.ne.s32.totalorder %s688_s13, %s684_s12  ;;  %p39_p4 = scmp.eq.s32.totalorder %s559_s17, 15 }
   0x9   : > { %s759_s23 = scalar_select %p20_p1, %s692_s14, %s22_s21  }
   0xa   : > { %p761_p5 = por %p33_p2, %p32_p0  ;;  %p765_p6 = por %p39_p4, %p38_p3 }
   0xb   : > { %p561_p7 = scmp.ge.s32.totalorder %s696_s15, 16 }
   0xc   : > { %s85_s26 = sand.u32 (!%p561_p7), 1, %s696_s15   ;;  %s563_s27 = sshll.u32 (!%p561_p7), %s696_s15, 1 }
   0xd   : > { %83 = sbr.rel (%p561_p7) target bundleno = 20 (0x14), region = 16  ;;  %s562_s28 = sshll.u32 (!%p561_p7), %s85_s26, 1 }
   0xe   : > { %s89_s4 = scalar_lea.vmem (!%p561_p7), %s896_s0, %s563_s27  ;;  %s87_s5 = scalar_lea.vmem (!%p561_p7), [#allocation1], %s562_s28 }
  0x12   : > { %v106_v0 = vld [vmem:[%s89_s4] sm:$0x3] }
  0x13   : > { %107 = vst [vmem:[%s87_s5] sm:$0x3] %v106_v0 }
  0x14 PF: > { %p564_p8 = scmp.ge.s32.totalorder %s696_s15, 1  ;;  %p124_p9 = scmp.lt.s32.totalorder %s696_s15, 17 }
  0x16   : > { %p125_p10 = pnand %p564_p8, %p124_p9 }
  0x18   : > { %128 = sbr.rel (%p125_p10) target bundleno = 476 (0x1dc), region = 50 }
  0x1d   : > { %s135_s6 = sand.u32 1, %s744_s16   ;;  %s146_s7 = sand.u32 1, %s688_s13   ;;  %v168_v1 = vlaneseq  ;;  %v702_v4 = vmov 0  }
  0x1e   : > { %s779_s8 = sshll.u32 %s135_s6, 1  ;;  %s783_s9 = sshll.u32 %s146_s7, 3 }
  0x1f   : > { %v786_v2 = vshrl.u32 %v168_v1, 7  ;;  %s137_s10 = scalar_lea.vmem [#allocation1], %s779_s8  ;;  %s163_s11 = sand.u32 7, %s744_s16  }
  0x20   : > { %v157_v3 = vld [vmem:[%s137_s10] sm:$0x3]  ;;  %s148_s17 = scalar_lea.vmem [#allocation4], %s783_s9  ;;  %s900_s20 = scalar_lea.vmem [#allocation6], %s783_s9 }
  0x21   : > { %158 = vst [vmem:[#allocation0] sm:$0x3] %v157_v3  ;;  %s793_s19 = scalar_lea.vmem %s148_s17, %s163_s11 [#allocation4]  ;;  %s798_s21 = scalar_lea.vmem %s900_s20, %s163_s11 [#allocation6] }
  0x22   : > { %172 = vst [vmem:[#allocation7] sm:$0xff] %v786_v2  ;;  %s141_s22 = scalar_lea.vmem [#allocation3], %s779_s8  ;;  %s803_s26 = smov 0  }
  0x23   : > { %167 = vst [vmem:[%s793_s19] sm:$0x1] %v702_v4 }
  0x28   : > { %v161_v5 = vld [vmem:[#allocation0] sm:$0xff] }
  0x29   : > { %162 = vst [vmem:[#allocation2] sm:$0xff] %v161_v5 }
  0x2a LB: >> { %vm188_vm0 = vcmp.lt.s32.totalorder %v786_v2, 2  ;;  %v810_v8 = vstv %s700_s26  ;;  %s229_s27 = ssub.s32 128, %s700_s26  ;;  %v235_v39 = vand.u32 127, %v168_v1  ;;  %s241_s28 = scalar_lea.vmem [#allocation2], %s700_s26  ;;  %v238_v42 = vld [vmem:[%s793_s19] ss:$0 sm:$0xff]  ;;  %s700_s26 = sphi %s803_s26, %s178_s26  }
  0x2b   : >> { %vm187_vm1 = vcmp.ge.s32.totalorder %v786_v2, %v810_v8  ;;  %s247_s4 = scalar_lea.vmem [#allocation7], %s700_s26  ;;  %vm267_vm14 = vcmp.gt.s32.totalorder %v786_v2, %v810_v8  ;;  %s178_s26 = sadd.s32 1, %s700_s26  }
  0x2c   : >> { %vm189_vm3 = vmand %vm187_vm1, %vm188_vm0  ;;  %vm236_vm12 = vcmp.eq.s32.totalorder %v235_v39, %v810_v8  ;;  %v249_v44 = vld [vmem:[%s247_s4] ss:$0 sm:$0xff]  ;;  %p175_p11 = scmp.ge.s32.totalorder %s178_s26, 2  }
  0x2d   : > { %s397_s6 = sshrl.u32 (%p175_p11), %s744_s16, 3  ;;  %s650_s20 = scalar_lea.hbm (%p175_p11), %s898_s2, 16 }
  0x2e   : > { %s842_s10 = sshll.u32 (%p175_p11), %s397_s6, 3 }
  0x30   : >> { %v183_v6 = vld [vmem:[#allocation2] sm:$0xff]  ;;  %v243_v40 = vld [vmem:[%s241_s28] ss:$0 sm:$0xff] }
  0x31   : >> { %v184_v7 = vand.u32 2147483647, %v183_v6 }
  0x33   : >> { %vm569_vm2 = vcmp.gt.f32.partialorder %v184_v7, -inf }
  0x34   : >> { %vm191_vm4 = vmand %vm189_vm3, %vm569_vm2 }
  0x35   : >> { %v192_v9 = vsel %vm191_vm4, %v786_v2, %v810_v8  ;;  %v193_v10 = vsel %vm191_vm4, %v184_v7, -inf  ;;  %vm284_vm4 = vmand %vm267_vm14, %vm236_vm12 }
  0x36   : >> { %v194_v11 = vrot.slane %v193_v10, 1  ;;  %v195_v12 = vrot.slane %v192_v9, 1 }
  0x38   : >> { %vm196_vm5 = vcmp.ge.f32.partialorder %v194_v11, %v193_v10  ;;  %v199_v13 = vrot.slane %v194_v11, 1  ;;  %v200_v14 = vrot.slane %v195_v12, 1 }
  0x39   : >> { %v197_v15 = vsel %vm196_vm5, %v194_v11, %v193_v10  ;;  %v198_v16 = vsel %vm196_vm5, %v195_v12, %v192_v9  ;;  %vm259_vm5 = vcmp.gt.s32.totalorder %v235_v39, %v810_v8 }
  0x3a   : >> { %vm201_vm6 = vcmp.ge.f32.partialorder %v199_v13, %v197_v15  ;;  %v204_v17 = vrot.slane %v199_v13, 1  ;;  %v205_v18 = vrot.slane %v200_v14, 1 }
  0x3b   : >> { %v202_v19 = vsel %vm201_vm6, %v199_v13, %v197_v15  ;;  %v203_v20 = vsel %vm201_vm6, %v200_v14, %v198_v16 }
  0x3c   : >> { %vm206_vm7 = vcmp.ge.f32.partialorder %v204_v17, %v202_v19  ;;  %v209_v21 = vrot.slane %v204_v17, 1  ;;  %v210_v22 = vrot.slane %v205_v18, 1 }
  0x3d   : >> { %v207_v23 = vsel %vm206_vm7, %v204_v17, %v202_v19  ;;  %v208_v24 = vsel %vm206_vm7, %v205_v18, %v203_v20 }
  0x3e   : >> { %vm211_vm8 = vcmp.ge.f32.partialorder %v209_v21, %v207_v23  ;;  %v214_v25 = vrot.slane %v209_v21, 1  ;;  %v215_v26 = vrot.slane %v210_v22, 1 }
  0x3f   : >> { %v212_v27 = vsel %vm211_vm8, %v209_v21, %v207_v23  ;;  %v213_v28 = vsel %vm211_vm8, %v210_v22, %v208_v24 }
  0x40   : >> { %vm216_vm9 = vcmp.ge.f32.partialorder %v214_v25, %v212_v27  ;;  %v219_v29 = vrot.slane %v214_v25, 1  ;;  %v220_v30 = vrot.slane %v215_v26, 1 }
  0x41   : >> { %v217_v31 = vsel %vm216_vm9, %v214_v25, %v212_v27  ;;  %v218_v32 = vsel %vm216_vm9, %v215_v26, %v213_v28 }
  0x42   : >> { %vm221_vm10 = vcmp.ge.f32.partialorder %v219_v29, %v217_v31  ;;  %v224_v33 = vrot.slane %v219_v29, 1  ;;  %v225_v34 = vrot.slane %v220_v30, 1 }
  0x43   : >> { %v222_v35 = vsel %vm221_vm10, %v219_v29, %v217_v31  ;;  %v223_v36 = vsel %vm221_vm10, %v220_v30, %v218_v32 }
  0x44   : >> { %vm226_vm11 = vcmp.ge.f32.partialorder %v224_v33, %v222_v35 }
  0x45   : >> { %v228_v37 = vsel %vm226_vm11, %v225_v34, %v223_v36 }
  0x46   : >> { %230 = vrot.lane.b32.xlu0 %v228_v37, %s229_s27 }
  0xb8   : >> { %v231_v38 = vpop.permute.xlu0 %230 }
  0xb9   : >> { %578 = vpush %v231_v38 }
  0xea   : >> { %s579_s29 = spop %578 }
  0xeb   : >> { %v237_v41 = vstv %s579_s29  ;;  %s242_s30 = scalar_lea.vmem [#allocation2], %s579_s29  ;;  %s248_s5 = scalar_lea.vmem [#allocation7], %s579_s29 }
  0xec   : >> { %v244_v43 = vld [vmem:[%s242_s30] ss:$0 sm:$0xff]  ;;  %v239_v46 = vsel %vm236_vm12, %v237_v41, %v238_v42  ;;  %s403_s29 = sshll.u32 (%p175_p11), %s148_s17, 4  ;;  %s404_s29 = int_to_ptr.vmem [resolvable:$true] %s403_s29 }
  0xed   : >> { %v250_v45 = vld [vmem:[%s248_s5] ss:$0 sm:$0xff]  ;;  %245 = vst [vmem:[%s242_s30] sm:$0x1] %v243_v40  ;;  %vm253_vm13 = vcmp.ne.f32.partialorder %v244_v43, 0.0  ;;  %v260_v62 = vsel %vm259_vm5, %v244_v43, 0.0 }
  0xee   : >> { %246 = vst [vmem:[%s241_s28] sm:$0x1] %v244_v43  ;;  %vm254_vm15 = vmand %vm236_vm12, %vm253_vm13  ;;  %s401_s28 = scalar_lea.hbm (%p175_p11), %s898_s2, %s842_s10 }
  0xef   : >> { %251 = vst [vmem:[%s248_s5] sm:$0x1] %v249_v44  ;;  %v255_v47 = vsel %vm254_vm15, %v244_v43, 1.0  ;;  %s405_s30 = sshll.u32 (%p175_p11), %s401_s28, 4  ;;  %s406_s30 = int_to_ptr.hbm [resolvable:$true] %s405_s30 }
  0xf0   : >> { %252 = vst [vmem:[%s247_s4] sm:$0x1] %v250_v45  ;;  %v268_v48 = vsel %vm267_vm14, %v255_v47, 1.0  ;;  %s644_s26 = sshra.s32 (%p175_p11), %s406_s30, 4  ;;  %s645_s26 = int_to_ptr.hbm [resolvable:$true] %s644_s26 }
  0xf1   : >> { %628 = vrcp.f32 %v268_v48  ;;  %240 = vst [vmem:[%s793_s19] sm:$0x1] %v239_v46  ;;  %v280_v52 = vand.u32 2147483648, %v268_v48  ;;  %v278_v54 = vand.u32 2147483647, %v268_v48  ;;  %vm274_vm1 = vweird.f32 %v268_v48  ;;  %s351_s19 = scalar_lea.sflag (%p175_p11), [#allocation5], %s146_s7  ;;  %s646_s4 = scalar_lea.hbm (%p175_p11), %s645_s26, 8 }
  0xf2   : > { %p647_p12 = scmp.ne.s32.totalorder (%p175_p11), %s645_s26, %s646_s4  ;;  %p651_p1 = scmp.lt.s32.totalorder (%p175_p11), %s645_s26, %s898_s2 }
  0xf3   : >> { %v281_v56 = vor.u32 1.1754944e-38, %v280_v52  ;;  %vm279_vm3 = vcmp.eq.f32.partialorder %v278_v54, 8.507059e+37  ;;  %p652_p2 = scmp.lt.s32.totalorder (%p175_p11), %s650_s20, %s646_s4 }
  0xf4   : > { %p648_p13 = pnand (%p175_p11), %p647_p12, %p761_p5 }
  0xf5   : >> { %v264_v58 = vld [vmem:[#allocation2] sm:$0xff]  ;;  %p653_p3 = por (%p175_p11), %p652_p2, %p651_p1 }
  0xf6   : > { %p649_p0 = pneg (%p175_p11), %p648_p13 }
  0xf7   : >> { %v629_v49 = vpop.eup %628  ;;  %v291_v4 = vld [vmem:[#allocation7] sm:$0xff] (%p175_p11) }
  0xf8   : >> { %v270_v50 = vmul.f32 %v629_v49, %v268_v48  ;;  %vm275_vm0 = vweird.f32 %v629_v49  ;;  %p654_p4 = pnand (%p175_p11), %p653_p3, %p649_p0 }
  0xf9   : >> { %vm276_vm2 = vmor %vm274_vm1, %vm275_vm0 }
  0xfa   : >> { %v271_v51 = vsub.f32 1.0, %v270_v50 }
  0xfc   : >> { %v272_v53 = vmul.f32 %v629_v49, %v271_v51 }
  0xfe   : >> { %v273_v55 = vadd.f32 %v629_v49, %v272_v53 }
 0x100   : >> { %v277_v57 = vsel %vm276_vm2, %v629_v49, %v273_v55 }
 0x101   : >> { %v282_v59 = vsel %vm279_vm3, %v281_v56, %v277_v57 }
 0x102   : >> { %v283_v60 = vmul.f32 %v282_v59, %v264_v58 }
 0x104   : >> { %v285_v61 = vsel %vm284_vm4, %v283_v60, 0.0 }
 0x105   : >> { %286 = vadd.xlane.f32.xlu0 %v285_v61 }
 0x12e   : > { %307 = vxpose.xlu0.b32.start.end [1/1] (short) (narrow) (%p175_p11), %v291_v4, 8 }
 0x178   : >> { %v287_v63 = vpop.xlane.xlu0 %286 }
 0x179   : >> { %v288_v0 = vmul.f32 %v287_v63, %v260_v62  ;;  %177 = sbr.rel (!%p175_p11) target bundleno = 42 (0x2a), region = 206 }
 0x17b   : >> { %v289_v3 = vsub.f32 %v283_v60, %v288_v0 }
 0x17d   : >> { %290 = vst [vmem:[#allocation2] sm:$0xff] %v289_v3 }
 0x17e   : > { %657 = shalt.err (!%p654_p4)
}
 0x17f   : > { %580 = dma.vmem_to_hbm [thread:$0]  (%p761_p5), %s404_s29, 128, %s406_s30, %s351_s19  }
 0x180   : > { %s573_s7 = sshll.u32 %s744_s16, 1  ;;  %s414_s29 = scalar_lea.vmem (%p761_p5), %s899_s3, %s842_s10 }
 0x181   : > { %s360_s5 = scalar_lea.vmem %s897_s1, %s573_s7  ;;  %s903_s30 = scalar_lea.vmem (%p761_p5), [#allocation6], %s783_s9 }
 0x184   : > { %v342_v1 = vld [vmem:[#allocation2] sm:$0x3] }
 0x185   : > { %345 = vst [vmem:[%s141_s22] sm:$0x3] %v342_v1 }
 0x18c   : > { %v377_v2 = vld [vmem:[%s141_s22] sm:$0x3] }
 0x18d   : > { %378 = vst [vmem:[%s360_s5] sm:$0x3] %v377_v2 }
 0x1cf   : > { %411 = sbr.rel (!%p761_p5) target bundleno = 476 (0x1dc), region = 96 }
 0x1d2   : > { %v323_v5 = vpop.trf.xlu0 }
 0x1d3   : > { %339 = vst [vmem:[%s798_s21] sm:$0x1] %v323_v5 }
 0x1da   : > { %v443_v6 = vld [vmem:[%s903_s30] sm:$0xff] }
 0x1db   : > { %444 = vst [vmem:[%s414_s29] sm:$0xff] %v443_v6 }
 0x1dc PF: > { %p586_p7 = scmp.ge.s32.totalorder %s696_s15, 2  ;;  %s460_s16 = sand.u32 1, %s684_s12  }
 0x1dd   : > { %s461_s24 = scalar_lea.sflag [#allocation5], %s460_s16 }
 0x1de   : > { %p583_p8 = pnand %p586_p7, %p765_p6 }
 0x1e0   : > { %p584_p9 = pneg %p583_p8 }
 0x1e2   : > { %679 = dma.done.wait (%p584_p9), %s461_s24, 128  }
 0x1e3   : > { %681 = vsyncadd (%p584_p9), %s461_s24, 4294967168  ;;  %p10_p5 = scmp.ge.s32.totalorder %s748_s18, 18   ;;  %s904_s12 = smov %s688_s13 }
 0x1e4   : > { %s905_s13 = smov %s692_s14  ;;  %s906_s14 = smov %s759_s23 }
 0x1e5   : > { %s907_s15 = smov %s748_s18  ;;  %12 = sbr.rel (!%p10_p5) target bundleno = 3 (0x3), region = 217 }
 0x1ea   :  { %474 = vsyncpa [#allocation5], 1 }
 0x1eb   :  { %476 = vsyncpa [#allocation5 + $0x1], 1 }

// kernel: custom-call.13
= control target key start
LH: loop header
LB: loop body
LE: loop exit
PB: predicated region body
PF: predicated region fallthrough
CT: control target
= control target key end

     0   :  { %s363_s6 = smov 0   ;;  %s365_s7 = smov 0   ;;  %s412_s0 = inlined_call_operand.vmem [shape: f32[16,1,2,2], index: 0, kind: input, shape index: {}]   ;;  %s413_s1 = inlined_call_operand.vmem [shape: f32[16,1,2,2], index: 1, kind: output, shape index: {}]  }
   0x1   :  { %s367_s8 = smov 0  }
   0x2 LB: > { %s289_s9 = sadd.s32 4294967295, %s350_s8   ;;  %s33_s10 = sadd.s32 1, %s346_s7  ;;  %s350_s8 = sphi %s367_s8, %s7_s8   ;;  %s346_s7 = sphi %s365_s7, %s415_s7   ;;  %s342_s6 = sphi %s363_s6, %s414_s6  }
   0x3   : > { %p35_p0 = scmp.ge.s32.totalorder %s33_s10, 16  ;;  %p291_p1 = scmp.ge.s32.totalorder %s350_s8, 16 }
   0x4   : > { %s49_s11 = sand.u32 (!%p291_p1), 1, %s350_s8   ;;  %s293_s12 = sshll.u32 (!%p291_p1), %s346_s7, 1 }
   0x5   : > { %s417_s10 = smov (%p35_p0, %s33_s10), 0  ;;  %47 = sbr.rel (%p291_p1) target bundleno = 12 (0xc), region = 16 }
   0x6   : > { %s292_s13 = sshll.u32 (!%p291_p1), %s49_s11, 1  ;;  %s56_s16 = scalar_lea.vmem (!%p291_p1), %s412_s0, %s293_s12 }
   0x7   : > { %s51_s17 = scalar_lea.vmem (!%p291_p1), [#allocation1], %s292_s13 }
   0xa   : > { %v73_v0 = vld [vmem:[%s56_s16] sm:$0x3] }
   0xb   : > { %74 = vst [vmem:[%s51_s17] sm:$0x3] %v73_v0 }
   0xc PF: > { %p294_p2 = scmp.ge.s32.totalorder %s350_s8, 1  ;;  %p91_p3 = scmp.lt.s32.totalorder %s350_s8, 17 }
   0xe   : > { %p92_p4 = pnand %p294_p2, %p91_p3 }
  0x10   : > { %95 = sbr.rel (%p92_p4) target bundleno = 318 (0x13e), region = 50 }
  0x15   : > { %s390_s18 = sand.u32 1, %s289_s9   ;;  %v113_v1 = vlaneseq  ;;  %v352_v20 = vmov -1.0   ;;  %s298_s22 = sshll.u32 %s342_s6, 1 }
  0x16   : > { %s295_s19 = sshll.u32 %s390_s18, 1  ;;  %s196_s25 = scalar_lea.vmem %s413_s1, %s298_s22 }
  0x17   : > { %s104_s20 = scalar_lea.vmem [#allocation1], %s295_s19  ;;  %v114_v3 = vand.u32 127, %v113_v1  ;;  %v117_v4 = vshrl.u32 %v113_v1, 7  ;;  %s108_s21 = scalar_lea.vmem [#allocation3], %s295_s19 }
  0x18   : > { %v111_v2 = vld [vmem:[%s104_s20] sm:$0x3] }
  0x19   : > { %112 = vst [vmem:[#allocation0] sm:$0x3] %v111_v2  ;;  %vm119_vm0 = vcmp.eq.s32.totalorder %v117_v4, %v114_v3  ;;  %vm115_vm1 = vcmp.lt.s32.totalorder %v114_v3, 2  ;;  %vm124_vm2 = vcmp.ge.s32.totalorder %v117_v4, %v114_v3  ;;  %vm151_vm8 = vcmp.eq.s32.totalorder %v114_v3, 0 }
  0x1a   : > { %vm125_vm3 = vmand %vm124_vm2, %vm115_vm1  ;;  %vm148_vm9 = vcmp.eq.s32.totalorder %v114_v3, %v117_v4  ;;  %v152_v21 = vsel %vm151_vm8, 1.0, %v352_v20  ;;  %vm159_vm10 = vcmp.eq.s32.totalorder %v114_v3, 1 }
  0x1b   : > { %v153_v22 = vsel %vm148_vm9, %v152_v21, 0.0 }
  0x20   : > { %v120_v5 = vld [vmem:[#allocation0] sm:$0xff] }
  0x21   : > { %v121_v6 = vsel %vm119_vm0, %v120_v5, 0.0  ;;  %v126_v15 = vsel %vm125_vm3, %v120_v5, 0.0 }
  0x22   : > { %122 = vadd.xlane.f32.xlu0 %v121_v6 }
  0x95   : > { %v123_v7 = vpop.xlane.xlu0 %122 }
  0x96   : > { %326 = vrcp.f32 %v123_v7  ;;  %v138_v11 = vand.u32 2147483648, %v123_v7  ;;  %v136_v13 = vand.u32 2147483647, %v123_v7  ;;  %vm132_vm5 = vweird.f32 %v123_v7 }
  0x98   : > { %v139_v16 = vor.u32 1.1754944e-38, %v138_v11  ;;  %vm137_vm7 = vcmp.eq.f32.partialorder %v136_v13, 8.507059e+37 }
  0x9c   : > { %v327_v8 = vpop.eup %326 }
  0x9d   : > { %v128_v9 = vmul.f32 %v327_v8, %v123_v7  ;;  %vm133_vm4 = vweird.f32 %v327_v8 }
  0x9e   : > { %vm134_vm6 = vmor %vm132_vm5, %vm133_vm4 }
  0x9f   : > { %v129_v10 = vsub.f32 1.0, %v128_v9 }
  0xa1   : > { %v130_v12 = vmul.f32 %v327_v8, %v129_v10 }
  0xa3   : > { %v131_v14 = vadd.f32 %v327_v8, %v130_v12 }
  0xa5   : > { %v135_v17 = vsel %vm134_vm6, %v327_v8, %v131_v14 }
  0xa6   : > { %v140_v18 = vsel %vm137_vm7, %v139_v16, %v135_v17 }
  0xa7   : > { %v141_v19 = vmul.f32 %v140_v18, %v126_v15 }
  0xa9   : > { %142 = vst [vmem:[#allocation4] sm:$0xff] %v141_v19 }
  0xb0   : > { %v155_v23 = vld [vmem:[#allocation4 + $0x1] ss:$0 sm:$0xff] }
  0xb1   : > { %v156_v24 = vxor.u32 2147483648, %v155_v23 }
  0xb3   : > { %v160_v25 = vmul.f32 %v156_v24, %v153_v22 }
  0xb5   : > { %161 = vadd.xlane.f32.xlu0 %v160_v25 }
 0x128   : > { %v162_v26 = vpop.xlane.xlu0 %161 }
 0x129   : > { %v163_v27 = vsel %vm159_vm10, %v162_v26, %v153_v22 }
 0x12a   : > { %v178_v28 = vmul.f32 %v163_v27, %v140_v18 }
 0x12c   : > { %v180_v29 = vsel %vm132_vm5, %v163_v27, %v178_v28 }
 0x12d   : > { %181 = vst [vmem:[#allocation2] sm:$0xff] %v180_v29 }
 0x134   : > { %v184_v30 = vld [vmem:[#allocation2] sm:$0x3] }
 0x135   : > { %187 = vst [vmem:[%s108_s21] sm:$0x3] %v184_v30 }
 0x13c   : > { %v213_v31 = vld [vmem:[%s108_s21] sm:$0x3] }
 0x13d   : > { %214 = vst [vmem:[%s196_s25] sm:$0x3] %v213_v31 }
 0x13e PF: > { %s7_s8 = sadd.s32 1, %s350_s8   ;;  %s414_s6 = smov %s346_s7 }
 0x13f   : > { %p4_p5 = scmp.ge.s32.totalorder %s7_s8, 18   ;;  %s415_s7 = smov %s417_s10 }
 0x141   :  { %6 = sbr.rel (!%p4_p5) target bundleno = 2 (0x2), region = 111 }

// kernel: custom-call.12
= control target key start
LH: loop header
LB: loop body
LE: loop exit
PB: predicated region body
PF: predicated region fallthrough
CT: control target
= control target key end

     0   :  { %s362_s6 = smov 0   ;;  %s364_s7 = smov 0   ;;  %s411_s0 = inlined_call_operand.vmem [shape: f32[16,1,2,2], index: 0, kind: input, shape index: {}]   ;;  %s412_s1 = inlined_call_operand.vmem [shape: f32[16,1,2,2], index: 1, kind: output, shape index: {}]  }
   0x1   :  { %s366_s8 = smov 0  }
   0x2 LB: > { %s288_s9 = sadd.s32 4294967295, %s349_s8   ;;  %s33_s10 = sadd.s32 1, %s345_s7  ;;  %s349_s8 = sphi %s366_s8, %s7_s8   ;;  %s345_s7 = sphi %s364_s7, %s414_s7   ;;  %s341_s6 = sphi %s362_s6, %s413_s6  }
   0x3   : > { %p35_p0 = scmp.ge.s32.totalorder %s33_s10, 16  ;;  %p290_p1 = scmp.ge.s32.totalorder %s349_s8, 16 }
   0x4   : > { %s49_s11 = sand.u32 (!%p290_p1), 1, %s349_s8   ;;  %s292_s12 = sshll.u32 (!%p290_p1), %s345_s7, 1 }
   0x5   : > { %s416_s10 = smov (%p35_p0, %s33_s10), 0  ;;  %47 = sbr.rel (%p290_p1) target bundleno = 12 (0xc), region = 16 }
   0x6   : > { %s291_s13 = sshll.u32 (!%p290_p1), %s49_s11, 1  ;;  %s56_s16 = scalar_lea.vmem (!%p290_p1), %s411_s0, %s292_s12 }
   0x7   : > { %s51_s17 = scalar_lea.vmem (!%p290_p1), [#allocation1], %s291_s13 }
   0xa   : > { %v73_v0 = vld [vmem:[%s56_s16] sm:$0x3] }
   0xb   : > { %74 = vst [vmem:[%s51_s17] sm:$0x3] %v73_v0 }
   0xc PF: > { %p293_p2 = scmp.ge.s32.totalorder %s349_s8, 1  ;;  %p91_p3 = scmp.lt.s32.totalorder %s349_s8, 17 }
   0xe   : > { %p92_p4 = pnand %p293_p2, %p91_p3 }
  0x10   : > { %95 = sbr.rel (%p92_p4) target bundleno = 318 (0x13e), region = 50 }
  0x15   : > { %s389_s18 = sand.u32 1, %s288_s9   ;;  %v113_v1 = vlaneseq  ;;  %v351_v20 = vmov -1.0   ;;  %s297_s22 = sshll.u32 %s341_s6, 1 }
  0x16   : > { %s294_s19 = sshll.u32 %s389_s18, 1  ;;  %s195_s25 = scalar_lea.vmem %s412_s1, %s297_s22 }
  0x17   : > { %s104_s20 = scalar_lea.vmem [#allocation1], %s294_s19  ;;  %v114_v3 = vand.u32 127, %v113_v1  ;;  %v117_v4 = vshrl.u32 %v113_v1, 7  ;;  %s108_s21 = scalar_lea.vmem [#allocation3], %s294_s19 }
  0x18   : > { %v111_v2 = vld [vmem:[%s104_s20] sm:$0x3] }
  0x19   : > { %112 = vst [vmem:[#allocation0] sm:$0x3] %v111_v2  ;;  %vm119_vm0 = vcmp.eq.s32.totalorder %v117_v4, %v114_v3  ;;  %vm115_vm1 = vcmp.lt.s32.totalorder %v114_v3, 2  ;;  %vm124_vm2 = vcmp.le.s32.totalorder %v117_v4, %v114_v3  ;;  %vm151_vm8 = vcmp.eq.s32.totalorder %v114_v3, 1 }
  0x1a   : > { %vm125_vm3 = vmand %vm124_vm2, %vm115_vm1  ;;  %vm148_vm9 = vcmp.eq.s32.totalorder %v114_v3, %v117_v4  ;;  %v152_v21 = vsel %vm151_vm8, 1.0, %v351_v20  ;;  %vm158_vm10 = vcmp.eq.s32.totalorder %v114_v3, 0 }
  0x1b   : > { %v153_v22 = vsel %vm148_vm9, %v152_v21, 0.0 }
  0x20   : > { %v120_v5 = vld [vmem:[#allocation0] sm:$0xff] }
  0x21   : > { %v121_v6 = vsel %vm119_vm0, %v120_v5, 0.0  ;;  %v126_v15 = vsel %vm125_vm3, %v120_v5, 0.0 }
  0x22   : > { %122 = vadd.xlane.f32.xlu0 %v121_v6 }
  0x95   : > { %v123_v7 = vpop.xlane.xlu0 %122 }
  0x96   : > { %325 = vrcp.f32 %v123_v7  ;;  %v138_v11 = vand.u32 2147483648, %v123_v7  ;;  %v136_v13 = vand.u32 2147483647, %v123_v7  ;;  %vm132_vm5 = vweird.f32 %v123_v7 }
  0x98   : > { %v139_v16 = vor.u32 1.1754944e-38, %v138_v11  ;;  %vm137_vm7 = vcmp.eq.f32.partialorder %v136_v13, 8.507059e+37 }
  0x9c   : > { %v326_v8 = vpop.eup %325 }
  0x9d   : > { %v128_v9 = vmul.f32 %v326_v8, %v123_v7  ;;  %vm133_vm4 = vweird.f32 %v326_v8 }
  0x9e   : > { %vm134_vm6 = vmor %vm132_vm5, %vm133_vm4 }
  0x9f   : > { %v129_v10 = vsub.f32 1.0, %v128_v9 }
  0xa1   : > { %v130_v12 = vmul.f32 %v326_v8, %v129_v10 }
  0xa3   : > { %v131_v14 = vadd.f32 %v326_v8, %v130_v12 }
  0xa5   : > { %v135_v17 = vsel %vm134_vm6, %v326_v8, %v131_v14 }
  0xa6   : > { %v140_v18 = vsel %vm137_vm7, %v139_v16, %v135_v17 }
  0xa7   : > { %v141_v19 = vmul.f32 %v140_v18, %v126_v15 }
  0xa9   : > { %142 = vst [vmem:[#allocation4] sm:$0xff] %v141_v19 }
  0xb0   : > { %v154_v23 = vld [vmem:[#allocation4] ss:$0 sm:$0xff] }
  0xb1   : > { %v155_v24 = vxor.u32 2147483648, %v154_v23 }
  0xb3   : > { %v159_v25 = vmul.f32 %v155_v24, %v153_v22 }
  0xb5   : > { %160 = vadd.xlane.f32.xlu0 %v159_v25 }
 0x128   : > { %v161_v26 = vpop.xlane.xlu0 %160 }
 0x129   : > { %v162_v27 = vsel %vm158_vm10, %v161_v26, %v153_v22 }
 0x12a   : > { %v177_v28 = vmul.f32 %v162_v27, %v140_v18 }
 0x12c   : > { %v179_v29 = vsel %vm132_vm5, %v162_v27, %v177_v28 }
 0x12d   : > { %180 = vst [vmem:[#allocation2] sm:$0xff] %v179_v29 }
 0x134   : > { %v183_v30 = vld [vmem:[#allocation2] sm:$0x3] }
 0x135   : > { %186 = vst [vmem:[%s108_s21] sm:$0x3] %v183_v30 }
 0x13c   : > { %v212_v31 = vld [vmem:[%s108_s21] sm:$0x3] }
 0x13d   : > { %213 = vst [vmem:[%s195_s25] sm:$0x3] %v212_v31 }
 0x13e PF: > { %s7_s8 = sadd.s32 1, %s349_s8   ;;  %s413_s6 = smov %s345_s7 }
 0x13f   : > { %p4_p5 = scmp.ge.s32.totalorder %s7_s8, 18   ;;  %s414_s7 = smov %s416_s10 }
 0x141   :  { %6 = sbr.rel (!%p4_p5) target bundleno = 2 (0x2), region = 110 }

// kernel: layer_forward.1
= control target key start
LH: loop header
LB: loop body
LE: loop exit
PB: predicated region body
PF: predicated region fallthrough
CT: control target
= control target key end

     0   :  { %vm44_vm0 = vcmask 261120   ;;  %s974_s0 = inlined_call_operand.vmem [shape: f32[8,32], index: 0, kind: input, shape index: {}]   ;;  %s975_s1 = inlined_call_operand.vmem [shape: f32[32,512], index: 1, kind: input, shape index: {}]   ;;  %s976_s2 = inlined_call_operand.vmem [shape: f32[32,512], index: 2, kind: input, shape index: {}]   ;;  %s977_s3 = inlined_call_operand.vmem [shape: f32[512,16], index: 3, kind: input, shape index: {}]   ;;  %s978_s4 = inlined_call_operand.vmem [shape: f32[32,16], index: 4, kind: input, shape index: {}]   ;;  %s979_s5 = inlined_call_operand.vmem [shape: f32[1,16], index: 5, kind: input, shape index: {}]   ;;  %s980_s6 = inlined_call_operand.vmem [shape: f32[8,4], index: 6, kind: input, shape index: {}]   ;;  %s981_s7 = inlined_call_operand.hbm [shape: f32[8,16], index: 7, kind: output, shape index: {}]  }
   0x1   :  { %v42_v0 = vld [vmem:[%s975_s1 + $0x70] sm:$0xff]  ;;  %v43_v1 = vld [vmem:[%s975_s1 + $0x78] sm:$0xff]  ;;  %v40_v2 = vld [vmem:[%s975_s1 + $0x60] sm:$0xff] }
   0x2   :  { %100 = vmatpush.msra.mxu2 %v42_v0  ;;  %120 = vmatpush.msra.mxu3 %v43_v1  ;;  %v41_v3 = vld [vmem:[%s975_s1 + $0x68] sm:$0xff]  ;;  %v38_v4 = vld [vmem:[%s975_s1 + $0x50] sm:$0xff]  ;;  %v39_v5 = vld [vmem:[%s975_s1 + $0x58] sm:$0xff] }
   0x3   :  { %60 = vmatpush.msra.mxu0 %v40_v2  ;;  %80 = vmatpush.msra.mxu1 %v41_v3  ;;  %v36_v6 = vld [vmem:[%s975_s1 + $0x40] sm:$0xff]  ;;  %v37_v7 = vld [vmem:[%s975_s1 + $0x48] sm:$0xff]  ;;  %v34_v8 = vld [vmem:[%s975_s1 + $0x30] sm:$0xff] }
   0x4   :  { %101 = vmatpush.msra.mxu2 %v38_v4  ;;  %121 = vmatpush.msra.mxu3 %v39_v5  ;;  %v35_v9 = vld [vmem:[%s975_s1 + $0x38] sm:$0xff]  ;;  %v32_v10 = vld [vmem:[%s975_s1 + $0x20] sm:$0xff]  ;;  %v33_v11 = vld [vmem:[%s975_s1 + $0x28] sm:$0xff] }
   0x5   :  { %61 = vmatpush.msra.mxu0 %v36_v6  ;;  %81 = vmatpush.msra.mxu1 %v37_v7  ;;  %v30_v12 = vld [vmem:[%s975_s1 + $0x10] sm:$0xff]  ;;  %v31_v13 = vld [vmem:[%s975_s1 + $0x18] sm:$0xff]  ;;  %v669_v14 = vld [vmem:[%s974_s0] sm:$0xff] }
   0x6   :  { %102 = vmatpush.msra.mxu2 %v34_v8  ;;  %122 = vmatpush.msra.mxu3 %v35_v9  ;;  %v142_v15 = vld [vmem:[%s976_s2 + $0x70] sm:$0xff]  ;;  %v28_v16 = vld [vmem:[%s975_s1] sm:$0xff]  ;;  %v29_v17 = vld [vmem:[%s975_s1 + $0x8] sm:$0xff] }
   0x7   :  { %62 = vmatpush.msra.mxu0 %v32_v10  ;;  %82 = vmatpush.msra.mxu1 %v33_v11  ;;  %v143_v18 = vld [vmem:[%s976_s2 + $0x78] sm:$0xff]  ;;  %v138_v19 = vld [vmem:[%s976_s2 + $0x50] sm:$0xff]  ;;  %v140_v20 = vld [vmem:[%s976_s2 + $0x60] sm:$0xff] }
   0x8   :  { %103 = vmatpush.msra.mxu2 %v30_v12  ;;  %123 = vmatpush.msra.mxu3 %v31_v13  ;;  %v141_v21 = vld [vmem:[%s976_s2 + $0x68] sm:$0xff]  ;;  %v139_v22 = vld [vmem:[%s976_s2 + $0x58] sm:$0xff]  ;;  %v134_v23 = vld [vmem:[%s976_s2 + $0x30] sm:$0xff] }
   0x9   :  { %513 = vmatmul.msk.f32.vlgmr.msra.gmra.mxu2 %vm44_vm0, %v669_v14  ;;  %514 = vmatmul.msk.f32.vlgmr.msra.gmra.mxu3 %vm44_vm0, %v669_v14  ;;  %v136_v24 = vld [vmem:[%s976_s2 + $0x40] sm:$0xff]  ;;  %v137_v25 = vld [vmem:[%s976_s2 + $0x48] sm:$0xff]  ;;  %v135_v26 = vld [vmem:[%s976_s2 + $0x38] sm:$0xff] }
   0xa   :  { %196 = vmatpush.msrb.mxu2 %v142_v15  ;;  %63 = vmatpush.msra.mxu0 %v28_v16  ;;  %v130_v27 = vld [vmem:[%s976_s2 + $0x10] sm:$0xff]  ;;  %v132_v28 = vld [vmem:[%s976_s2 + $0x20] sm:$0xff]  ;;  %v133_v29 = vld [vmem:[%s976_s2 + $0x28] sm:$0xff] }
   0xb   :  { %83 = vmatpush.msra.mxu1 %v29_v17  ;;  %216 = vmatpush.msrb.mxu3 %v143_v18  ;;  %v131_v30 = vld [vmem:[%s976_s2 + $0x18] sm:$0xff]  ;;  %v128_v31 = vld [vmem:[%s976_s2] sm:$0xff]  ;;  %v129_v32 = vld [vmem:[%s976_s2 + $0x8] sm:$0xff] }
   0xc   :  { %511 = vmatmul.msk.f32.vlgmr.msra.gmra.mxu0 %vm44_vm0, %v669_v14  ;;  %512 = vmatmul.msk.f32.vlgmr.msra.gmra.mxu1 %vm44_vm0, %v669_v14  ;;  %v243_v33 = vld [vmem:[%s977_s3 + $0x78] sm:$0xff]  ;;  %v242_v37 = vld [vmem:[%s977_s3 + $0x70] sm:$0xff]  ;;  %v241_v41 = vld [vmem:[%s977_s3 + $0x68] sm:$0xff] }
   0xd   :  { %197 = vmatpush.msrb.mxu2 %v138_v19  ;;  %156 = vmatpush.msrb.mxu0 %v140_v20  ;;  %v259_v34 = vld [vmem:[%s977_s3 + $0xf8] sm:$0xff]  ;;  %v258_v38 = vld [vmem:[%s977_s3 + $0xf0] sm:$0xff]  ;;  %v257_v42 = vld [vmem:[%s977_s3 + $0xe8] sm:$0xff] }
   0xe   :  { %176 = vmatpush.msrb.mxu1 %v141_v21  ;;  %217 = vmatpush.msrb.mxu3 %v139_v22  ;;  %v275_v35 = vld [vmem:[%s977_s3 + $0x178] sm:$0xff]  ;;  %v274_v39 = vld [vmem:[%s977_s3 + $0x170] sm:$0xff]  ;;  %v273_v43 = vld [vmem:[%s977_s3 + $0x168] sm:$0xff] }
   0xf   :  { %198 = vmatpush.msrb.mxu2 %v134_v23  ;;  %157 = vmatpush.msrb.mxu0 %v136_v24  ;;  %v291_v36 = vld [vmem:[%s977_s3 + $0x1f8] sm:$0xff]  ;;  %v290_v40 = vld [vmem:[%s977_s3 + $0x1f0] sm:$0xff]  ;;  %v289_v44 = vld [vmem:[%s977_s3 + $0x1e8] sm:$0xff] }
  0x10   :  { %177 = vmatpush.msrb.mxu1 %v137_v25  ;;  %218 = vmatpush.msrb.mxu3 %v135_v26 }
  0x11   :  { %199 = vmatpush.msrb.mxu2 %v130_v27  ;;  %158 = vmatpush.msrb.mxu0 %v132_v28 }
  0x12   :  { %178 = vmatpush.msrb.mxu1 %v133_v29  ;;  %219 = vmatpush.msrb.mxu3 %v131_v30 }
  0x13   :  { %517 = vmatmul.msk.f32.vlgmr.msrb.gmra.mxu2 %vm44_vm0, %v669_v14  ;;  %518 = vmatmul.msk.f32.vlgmr.msrb.gmra.mxu3 %vm44_vm0, %v669_v14 }
  0x14   :  { %159 = vmatpush.msrb.mxu0 %v128_v31  ;;  %179 = vmatpush.msrb.mxu1 %v129_v32 }
  0x15   :  { %515 = vmatmul.msk.f32.vlgmr.msrb.gmra.mxu0 %vm44_vm0, %v669_v14  ;;  %516 = vmatmul.msk.f32.vlgmr.msrb.gmra.mxu1 %vm44_vm0, %v669_v14 }
  0x16   :  { %292 = vmatpush.msra.mxu0 %v243_v33  ;;  %312 = vmatpush.msra.mxu1 %v259_v34 }
  0x17   :  { %332 = vmatpush.msra.mxu2 %v275_v35  ;;  %352 = vmatpush.msra.mxu3 %v291_v36 }
  0x18   :  { %293 = vmatpush.msra.mxu0 %v242_v37  ;;  %313 = vmatpush.msra.mxu1 %v258_v38 }
  0x19   :  { %12 = vsyncpa [#allocation3], 0  ;;  %v240_v45 = vld [vmem:[%s977_s3 + $0x60] sm:$0xff]  ;;  %333 = vmatpush.msra.mxu2 %v274_v39  ;;  %353 = vmatpush.msra.mxu3 %v290_v40  ;;  %v239_v49 = vld [vmem:[%s977_s3 + $0x58] sm:$0xff]  ;;  %v576_v39 = vmov 0   ;;  %vm447_vm1 = vcmask 97344  }
  0x1a   :  { %v256_v46 = vld [vmem:[%s977_s3 + $0xe0] sm:$0xff]  ;;  %294 = vmatpush.msra.mxu0 %v241_v41  ;;  %314 = vmatpush.msra.mxu1 %v257_v42  ;;  %v255_v50 = vld [vmem:[%s977_s3 + $0xd8] sm:$0xff]  ;;  %v238_v53 = vld [vmem:[%s977_s3 + $0x50] sm:$0xff]  ;;  %vm423_vm2 = vcmask 64544   ;;  %vm403_vm3 = vcmask 31744   ;;  %vm471_vm4 = vcmask 130144  }
  0x1b   :  { %v272_v47 = vld [vmem:[%s977_s3 + $0x160] sm:$0xff]  ;;  %334 = vmatpush.msra.mxu2 %v273_v43  ;;  %354 = vmatpush.msra.mxu3 %v289_v44  ;;  %v271_v51 = vld [vmem:[%s977_s3 + $0x158] sm:$0xff]  ;;  %v254_v54 = vld [vmem:[%s977_s3 + $0xd0] sm:$0xff]  ;;  %s578_s23 = smov 120   ;;  %s579_s24 = smov 116  }
  0x1c   :  { %v288_v48 = vld [vmem:[%s977_s3 + $0x1e0] sm:$0xff]  ;;  %295 = vmatpush.msra.mxu0 %v240_v45  ;;  %315 = vmatpush.msra.mxu1 %v256_v46  ;;  %v287_v52 = vld [vmem:[%s977_s3 + $0x1d8] sm:$0xff]  ;;  %v270_v55 = vld [vmem:[%s977_s3 + $0x150] sm:$0xff]  ;;  %s583_s25 = smov [#allocation2]   ;;  %s502_s29 = sshll.u32 %s981_s7, 4  ;;  %s503_s29 = int_to_ptr.hbm [resolvable:$true] %s502_s29 }
  0x1d   :  { %335 = vmatpush.msra.mxu2 %v272_v47  ;;  %355 = vmatpush.msra.mxu3 %v288_v48  ;;  %v286_v56 = vld [vmem:[%s977_s3 + $0x1d0] sm:$0xff]  ;;  %v237_v57 = vld [vmem:[%s977_s3 + $0x48] sm:$0xff]  ;;  %v236_v61 = vld [vmem:[%s977_s3 + $0x40] sm:$0xff]  ;;  %s500_s26 = sshll.u32 %s583_s25, 4  ;;  %s501_s26 = int_to_ptr.vmem [resolvable:$true] %s500_s26 }
  0x1e   :  { %296 = vmatpush.msra.mxu0 %v239_v49  ;;  %316 = vmatpush.msra.mxu1 %v255_v50  ;;  %v253_v58 = vld [vmem:[%s977_s3 + $0xc8] sm:$0xff]  ;;  %v252_v62 = vld [vmem:[%s977_s3 + $0xc0] sm:$0xff]  ;;  %v235_v1 = vld [vmem:[%s977_s3 + $0x38] sm:$0xff] }
  0x1f   :  { %336 = vmatpush.msra.mxu2 %v271_v51  ;;  %356 = vmatpush.msra.mxu3 %v287_v52  ;;  %v269_v59 = vld [vmem:[%s977_s3 + $0x148] sm:$0xff]  ;;  %v268_v63 = vld [vmem:[%s977_s3 + $0x140] sm:$0xff]  ;;  %v251_v2 = vld [vmem:[%s977_s3 + $0xb8] sm:$0xff] }
  0x20   :  { %297 = vmatpush.msra.mxu0 %v238_v53  ;;  %317 = vmatpush.msra.mxu1 %v254_v54  ;;  %v285_v60 = vld [vmem:[%s977_s3 + $0x1c8] sm:$0xff]  ;;  %v284_v0 = vld [vmem:[%s977_s3 + $0x1c0] sm:$0xff]  ;;  %v234_v3 = vld [vmem:[%s977_s3 + $0x30] sm:$0xff] }
  0x21   :  { %337 = vmatpush.msra.mxu2 %v270_v55  ;;  %357 = vmatpush.msra.mxu3 %v286_v56  ;;  %v250_v4 = vld [vmem:[%s977_s3 + $0xb0] sm:$0xff]  ;;  %v233_v5 = vld [vmem:[%s977_s3 + $0x28] sm:$0xff]  ;;  %v267_v7 = vld [vmem:[%s977_s3 + $0x138] sm:$0xff] }
  0x22   :  { %298 = vmatpush.msra.mxu0 %v237_v57  ;;  %318 = vmatpush.msra.mxu1 %v253_v58  ;;  %v249_v6 = vld [vmem:[%s977_s3 + $0xa8] sm:$0xff]  ;;  %v283_v8 = vld [vmem:[%s977_s3 + $0x1b8] sm:$0xff]  ;;  %v232_v9 = vld [vmem:[%s977_s3 + $0x20] sm:$0xff] }
  0x23   :  { %338 = vmatpush.msra.mxu2 %v269_v59  ;;  %358 = vmatpush.msra.mxu3 %v285_v60  ;;  %v248_v10 = vld [vmem:[%s977_s3 + $0xa0] sm:$0xff]  ;;  %v266_v11 = vld [vmem:[%s977_s3 + $0x130] sm:$0xff]  ;;  %v231_v13 = vld [vmem:[%s977_s3 + $0x18] sm:$0xff] }
  0x24   :  { %299 = vmatpush.msra.mxu0 %v236_v61  ;;  %319 = vmatpush.msra.mxu1 %v252_v62  ;;  %v282_v12 = vld [vmem:[%s977_s3 + $0x1b0] sm:$0xff]  ;;  %v247_v15 = vld [vmem:[%s977_s3 + $0x98] sm:$0xff]  ;;  %v265_v16 = vld [vmem:[%s977_s3 + $0x128] sm:$0xff] }
  0x25   :  { %339 = vmatpush.msra.mxu2 %v268_v63  ;;  %359 = vmatpush.msra.mxu3 %v284_v0  ;;  %v281_v17 = vld [vmem:[%s977_s3 + $0x1a8] sm:$0xff]  ;;  %v230_v18 = vld [vmem:[%s977_s3 + $0x10] sm:$0xff]  ;;  %v264_v20 = vld [vmem:[%s977_s3 + $0x120] sm:$0xff] }
  0x26   :  { %300 = vmatpush.msra.mxu0 %v235_v1  ;;  %320 = vmatpush.msra.mxu1 %v251_v2  ;;  %v246_v19 = vld [vmem:[%s977_s3 + $0x90] sm:$0xff]  ;;  %v280_v21 = vld [vmem:[%s977_s3 + $0x1a0] sm:$0xff]  ;;  %v229_v22 = vld [vmem:[%s977_s3 + $0x8] sm:$0xff] }
  0x27   :  { %340 = vmatpush.msra.mxu2 %v267_v7  ;;  %360 = vmatpush.msra.mxu3 %v283_v8  ;;  %v245_v23 = vld [vmem:[%s977_s3 + $0x88] sm:$0xff]  ;;  %v263_v24 = vld [vmem:[%s977_s3 + $0x118] sm:$0xff]  ;;  %v228_v26 = vld [vmem:[%s977_s3] sm:$0xff] }
  0x28   :  { %301 = vmatpush.msra.mxu0 %v234_v3  ;;  %321 = vmatpush.msra.mxu1 %v250_v4  ;;  %v279_v25 = vld [vmem:[%s977_s3 + $0x198] sm:$0xff]  ;;  %v244_v27 = vld [vmem:[%s977_s3 + $0x80] sm:$0xff]  ;;  %v262_v28 = vld [vmem:[%s977_s3 + $0x110] sm:$0xff] }
  0x29   :  { %341 = vmatpush.msra.mxu2 %v266_v11  ;;  %361 = vmatpush.msra.mxu3 %v282_v12  ;;  %v278_v29 = vld [vmem:[%s977_s3 + $0x190] sm:$0xff]  ;;  %v261_v30 = vld [vmem:[%s977_s3 + $0x108] sm:$0xff]  ;;  %v260_v32 = vld [vmem:[%s977_s3 + $0x100] sm:$0xff] }
  0x2a   :  { %302 = vmatpush.msra.mxu0 %v233_v5  ;;  %322 = vmatpush.msra.mxu1 %v249_v6  ;;  %v277_v31 = vld [vmem:[%s977_s3 + $0x188] sm:$0xff]  ;;  %v276_v33 = vld [vmem:[%s977_s3 + $0x180] sm:$0xff]  ;;  %v375_v34 = vld [vmem:[%s978_s4 + $0x18] sm:$0xff] }
  0x2b   :  { %342 = vmatpush.msra.mxu2 %v265_v16  ;;  %362 = vmatpush.msra.mxu3 %v281_v17  ;;  %v374_v35 = vld [vmem:[%s978_s4 + $0x10] sm:$0xff]  ;;  %v373_v36 = vld [vmem:[%s978_s4 + $0x8] sm:$0xff]  ;;  %v372_v37 = vld [vmem:[%s978_s4] sm:$0xff]  ;;  %v580_v17 = vmov 1  }
  0x2c   :  { %303 = vmatpush.msra.mxu0 %v232_v9  ;;  %323 = vmatpush.msra.mxu1 %v248_v10  ;;  %v948_v38 = vld [vmem:[%s980_s6] sm:$0xff] }
  0x2d   :  { %343 = vmatpush.msra.mxu2 %v264_v20  ;;  %363 = vmatpush.msra.mxu3 %v280_v21  ;;  %v533_v61 = vld [vmem:[%s979_s5] ss:$0 sm:$0xff]  ;;  %s577_s5 = smov 124  }
  0x2e   :  { %304 = vmatpush.msra.mxu0 %v231_v13  ;;  %324 = vmatpush.msra.mxu1 %v247_v15 }
  0x2f   :  { %344 = vmatpush.msra.mxu2 %v263_v24  ;;  %364 = vmatpush.msra.mxu3 %v279_v25  ;;  %v582_v24 = vmov 3  }
  0x30   :  { %305 = vmatpush.msra.mxu0 %v230_v18  ;;  %325 = vmatpush.msra.mxu1 %v246_v19 }
  0x31   :  { %345 = vmatpush.msra.mxu2 %v262_v28  ;;  %365 = vmatpush.msra.mxu3 %v278_v29 }
  0x32   :  { %306 = vmatpush.msra.mxu0 %v229_v22  ;;  %326 = vmatpush.msra.mxu1 %v245_v23  ;;  %v581_v23 = vmov 2  }
  0x33   :  { %346 = vmatpush.msra.mxu2 %v261_v30  ;;  %366 = vmatpush.msra.mxu3 %v277_v31 }
  0x34   :  { %307 = vmatpush.msra.mxu0 %v228_v26  ;;  %327 = vmatpush.msra.mxu1 %v244_v27 }
  0x35   :  { %347 = vmatpush.msra.mxu2 %v260_v32  ;;  %367 = vmatpush.msra.mxu3 %v276_v33 }
  0x36   :  { %388 = vmatpush.msrb.mxu0 %v375_v34  ;;  %528 = vset.pattern.permute.xlu1 %v576_v39 }
  0x37   :  { %418 = vperm.xlu1 %528, %v948_v38   ;;  %529 = vset.pattern.permute.xlu2 %v580_v17 }
  0x38   :  { %389 = vmatpush.msrb.mxu0 %v374_v35  ;;  %532 = vset.pattern.permute.xlu0 %v582_v24 }
  0x3a   :  { %390 = vmatpush.msrb.mxu0 %v373_v36 }
  0x3c   :  { %391 = vmatpush.msrb.mxu0 %v372_v37 }
  0x3f   :  { %530 = vset.pattern.permute.xlu1 %v581_v23 }
  0x89   :  { %v65_v40 = vpop.f32.mrf.mxu0  ;;  %v85_v41 = vpop.f32.mrf.mxu1 }
  0x8c   :  { %v105_v42 = vpop.f32.mrf.mxu2  ;;  %v125_v43 = vpop.f32.mrf.mxu3 }
  0x92   :  { %v161_v44 = vpop.f32.mrf.mxu0  ;;  %v181_v45 = vpop.f32.mrf.mxu1 }
  0x93   :  { %v224_v46 = vmul.f32 %v161_v44, %v65_v40  ;;  %v225_v47 = vmul.f32 %v181_v45, %v85_v41 }
  0x95   :  { %308 = vmatmul.f32.vlgmr.msra.gmra.mxu0 %v224_v46  ;;  %328 = vmatmul.f32.vlgmr.msra.gmra.mxu1 %v225_v47 }
  0x96   :  { %v201_v48 = vpop.f32.mrf.mxu2  ;;  %v221_v49 = vpop.f32.mrf.mxu3 }
  0x97   :  { %v226_v50 = vmul.f32 %v201_v48, %v105_v42  ;;  %v227_v51 = vmul.f32 %v221_v49, %v125_v43 }
  0x99   :  { %348 = vmatmul.f32.vlgmr.msra.gmra.mxu2 %v226_v50  ;;  %368 = vmatmul.f32.vlgmr.msra.gmra.mxu3 %v227_v51 }
  0x9d   :  { %519 = vmatmul.msk.f32.vlgmr.msrb.gmra.mxu0 %vm44_vm0, %v669_v14 }
  0xa9   :  { %v419_v3 = vpop.permute.xlu1 %418 }
 0x112   :  { %v309_v52 = vpop.f32.mrf.mxu0  ;;  %v329_v53 = vpop.f32.mrf.mxu1 }
 0x113   :  { %v330_v54 = vadd.f32 %v329_v53, %v309_v52 }
 0x11a   :  { %v393_v59 = vpop.f32.mrf.mxu0 }
 0x11c   :  { %v349_v55 = vpop.f32.mrf.mxu2  ;;  %v369_v57 = vpop.f32.mrf.mxu3 }
 0x11d   :  { %v350_v56 = vadd.f32 %v349_v55, %v330_v54 }
 0x11f   :  { %v370_v58 = vadd.f32 %v369_v57, %v350_v56 }
 0x121   :  { %v396_v60 = vmul.f32 -0.5, %v370_v58 }
 0x123   :  { %v397_v62 = vadd.f32 %v396_v60, %v393_v59 }
 0x125   :  { %v402_v63 = vadd.f32 %v533_v61, %v397_v62 }
 0x127   :  { %v448_v14 = vsel %vm447_vm1, %v402_v63, -inf  ;;  %v424_v0 = vsel %vm423_vm2, %v402_v63, -inf  ;;  %v404_v1 = vsel %vm403_vm3, %v402_v63, -inf  ;;  %v472_v2 = vsel %vm471_vm4, %v402_v63, -inf }
 0x128   :  { %449 = vmax.xlane.f32.xlu2 %v448_v14  ;;  %425 = vmax.xlane.f32.xlu1 %v424_v0 }
 0x129   :  { %405 = vmax.xlane.f32.xlu0 %v404_v1 }
 0x130   :  { %473 = vmax.xlane.f32.xlu2 %v472_v2 }
 0x141   :  { %466 = vperm.xlu1 %530, %v948_v38  }
 0x148   :  { %442 = vperm.xlu2 %529, %v948_v38  }
 0x149   :  { %531 = vset.pattern.permute.xlu1 %v582_v24 }
 0x14a   :  { %490 = vperm.xlu1 %531, %v948_v38  }
 0x19b   :  { %v426_v4 = vpop.xlane.xlu1 %425  ;;  %v450_v5 = vpop.xlane.xlu2 %449 }
 0x19c   :  { %v427_v6 = vsub.f32 %v402_v63, %v426_v4  ;;  %v451_v8 = vsub.f32 %v402_v63, %v450_v5  ;;  %v406_v18 = vpop.xlane.xlu0 %405 }
 0x19d   :  { %v407_v19 = vsub.f32 %v402_v63, %v406_v18 }
 0x19e   :  { %v428_v7 = vmul.f32 1.442695, %v427_v6  ;;  %v452_v9 = vmul.f32 1.442695, %v451_v8 }
 0x19f   :  { %v408_v20 = vmul.f32 1.442695, %v407_v19 }
 0x1a0   :  { %534 = vpow2.f32 %v428_v7 }
 0x1a1   :  { %536 = vpow2.f32 %v452_v9 }
 0x1a3   :  { %v474_v10 = vpop.xlane.xlu2 %473 }
 0x1a4   :  { %v475_v12 = vsub.f32 %v402_v63, %v474_v10 }
 0x1a6   :  { %v535_v11 = vpop.eup %534  ;;  %v476_v13 = vmul.f32 1.442695, %v475_v12 }
 0x1a7   :  { %431 = vrot.lane.b32.xlu0 %v535_v11, %s577_s5  ;;  %v537_v15 = vpop.eup %536 }
 0x1a8   :  { %538 = vpow2.f32 %v476_v13 }
 0x1a9   :  { %540 = vpow2.f32 %v408_v20 }
 0x1ab   :  { %v443_v35 = vpop.permute.xlu2 %442 }
 0x1ae   :  { %v539_v16 = vpop.eup %538 }
 0x1af   :  { %455 = vrot.lane.b32.xlu0 %v537_v15, %s578_s23  ;;  %v541_v21 = vpop.eup %540 }
 0x1b0   :  { %v410_v22 = vsel %vm403_vm3, %v541_v21, 0.0 }
 0x1b3   :  { %v467_v41 = vpop.permute.xlu1 %466 }
 0x1b7   :  { %479 = vrot.lane.b32.xlu0 %v539_v16, %s579_s24 }
 0x1bc   :  { %v491_v47 = vpop.permute.xlu1 %490 }
 0x1e1   :  { %411 = vadd.xlane.f32.xlu0 %v410_v22 }
 0x219   :  { %v432_v25 = vpop.permute.xlu0 %431 }
 0x21a   :  { %v434_v26 = vsel %vm403_vm3, %v432_v25, 0.0 }
 0x21b   :  { %435 = vadd.xlane.f32.xlu2 %v434_v26 }
 0x221   :  { %v456_v27 = vpop.permute.xlu0 %455 }
 0x222   :  { %v458_v28 = vsel %vm403_vm3, %v456_v27, 0.0 }
 0x223   :  { %459 = vadd.xlane.f32.xlu2 %v458_v28 }
 0x229   :  { %v480_v29 = vpop.permute.xlu0 %479 }
 0x22a   :  { %v482_v30 = vsel %vm403_vm3, %v480_v29, 0.0 }
 0x22b   :  { %483 = vadd.xlane.f32.xlu0 %v482_v30 }
 0x254   :  { %v412_v31 = vpop.xlane.xlu0 %411 }
 0x255   :  { %542 = vrcp.f32 %v412_v31 }
 0x25b   :  { %v543_v32 = vpop.eup %542 }
 0x25c   :  { %v414_v33 = vmul.f32 %v543_v32, %v541_v21 }
 0x25e   :  { %v421_v34 = vmul.f32 %v419_v3, %v414_v33 }
 0x260   :  { %422 = vst.msk [vmem:[#allocation2] sm:$0xff] %vm403_vm3, %v421_v34 }
 0x28e   :  { %v436_v36 = vpop.xlane.xlu2 %435 }
 0x28f   :  { %544 = vrcp.f32 %v436_v36 }
 0x295   :  { %v545_v37 = vpop.eup %544 }
 0x296   :  { %v438_v38 = vmul.f32 %v545_v37, %v535_v11  ;;  %v460_v39 = vpop.xlane.xlu2 %459 }
 0x297   :  { %546 = vrcp.f32 %v460_v39 }
 0x298   :  { %v445_v40 = vmul.f32 %v443_v35, %v438_v38 }
 0x29a   :  { %446 = vst.msk [vmem:[#allocation2] sm:$0xff] %vm423_vm2, %v445_v40 }
 0x29d   :  { %v547_v42 = vpop.eup %546 }
 0x29e   :  { %v462_v43 = vmul.f32 %v547_v42, %v537_v15  ;;  %v484_v44 = vpop.xlane.xlu0 %483 }
 0x29f   :  { %548 = vrcp.f32 %v484_v44 }
 0x2a0   :  { %v469_v45 = vmul.f32 %v467_v41, %v462_v43 }
 0x2a2   :  { %470 = vst.msk [vmem:[#allocation2] sm:$0xff] %vm447_vm1, %v469_v45 }
 0x2a5   :  { %v549_v46 = vpop.eup %548 }
 0x2a6   :  { %v486_v48 = vmul.f32 %v549_v46, %v539_v16 }
 0x2a8   :  { %v493_v49 = vmul.f32 %v491_v47, %v486_v48 }
 0x2aa   :  { %494 = vst.msk [vmem:[#allocation2] sm:$0xff] %vm471_vm4, %v493_v49 }
 0x2ab   :  { %505 = dma.vmem_to_hbm [thread:$0]  %s501_s26, 128, %s503_s29, [#allocation3]  }
 0x2ac   :  { %574 = dma.done.wait [#allocation3], 128  }
 0x2ad   :  { %575 = vsyncadd [#allocation3], 4294967168 }
 0x2ae   :  { %510 = vsyncpa [#allocation3], 1 }

</bundles_post_ra>
